<compile_context>
chip_gen: v7x
topology: tpu7x:2x2x1
jax: 0.10.0
libtpu: 0.0.40
codegen_flags: <defaults>
</compile_context>

<pallas_src>
import functools

import jax
import jax.numpy as jnp
import numpy as np
from jax import lax
from jax.experimental import pallas as pl
from jax.experimental.pallas import tpu as pltpu


# ----------------------------------------------------------------------------
# kernel
# ----------------------------------------------------------------------------
def convglu_kernel(x_ref, gamma_ref, beta_ref, wc_ref, wg_ref, bias_ref,
                   out_ref, *, eps):
    # x_ref:    (Cin*F, tT)   one (batch, T-tile) slab, row index = c*F + f
    # gamma/beta: (Cin*F, 1)  LayerNorm affine (flattened c-major, f-minor)
    # wc_ref:   (Cout*F, Cin*F)  block-circulant conv weight, f32
    # wg_ref:   (Cout*F, Cin*F)  block-circulant gate weight, bf16
    # bias_ref: (Cout*F, 1)      gate bias (bG[o] repeated over f)
    # out_ref:  (Cout*F, tT)
    x = x_ref[...].astype(jnp.float32)

    # LayerNorm over the joint (Cin, F) plane == over the sublane axis,
    # independently per lane column (= per (b, t)).
    mean = jnp.mean(x, axis=0, keepdims=True)                       # (1, tT)
    var = jnp.mean(jnp.square(x - mean), axis=0, keepdims=True)     # (1, tT)
    inv = lax.rsqrt(var + eps)
    ln = (x - mean) * inv * gamma_ref[...] + beta_ref[...]          # (CinF, tT)

    # Ungated conv stream: f32 operands, f32 accumulation (accuracy-sensitive).
    conv = jnp.dot(wc_ref[...], x, preferred_element_type=jnp.float32)

    # Gate stream: bf16 operands are plenty ahead of the sigmoid.
    gate = jnp.dot(wg_ref[...], ln.astype(jnp.bfloat16),
                   preferred_element_type=jnp.float32)
    gate = gate + bias_ref[...]

    out_ref[...] = (conv * jax.nn.sigmoid(gate)).astype(out_ref.dtype)


# ----------------------------------------------------------------------------
# host-side helpers
# ----------------------------------------------------------------------------
def _make_circulant(Wk, F):
    """Fold a K-tap circular conv along F into a (Cout*F, Cin*F) matrix.

    out[o*F + f] = sum_{c,k} Wk[o,c,k] * x[c*F + (f + k - pad) mod F]
    """
    Cout, Cin, K = Wk.shape
    pad = K // 2
    eye = jnp.eye(F, dtype=Wk.dtype)
    Wc = jnp.zeros((Cout, F, Cin, F), Wk.dtype)
    for k in range(K):
        shift = k - pad
        # P[f, f'] == 1 iff f' == (f + shift) mod F
        P = jnp.roll(eye, -shift, axis=0)
        Wc = Wc + Wk[:, None, :, None, k] * P[None, :, None, :]
    return Wc.reshape(Cout * F, Cin * F)


def _pad_to(n, m):
    return -(-n // m) * m


def _tile_bytes(rows, cols, itemsize):
    # VMEM tiles pad the sublane dim to 8 and the lane dim to 128 (rough model).
    return _pad_to(rows, 8) * _pad_to(cols, 128) * itemsize


def _choose_time_tile(T, cin_f, cout_f, vmem_budget_bytes=12 << 20):
    """Pick the T (lane) tile.  Mosaic needs the lane block dim to be either a
    multiple of 128 or the whole axis, so we only tile when T % 128 == 0."""
    if T % 128 != 0:
        return T
    # Rough per-lane-column cost: double-buffered in/out blocks plus the f32
    # temporaries (x, ln, conv, gate, out) inside the kernel body.
    per_col = (2 * cin_f + 2 * cout_f) * 4 + (3 * cin_f + 3 * cout_f) * 4
    tt = (vmem_budget_bytes // max(per_col, 1)) // 128 * 128
    tt = int(min(max(tt, 128), T))
    while T % tt:
        tt -= 128
    return max(tt, 128)


# ----------------------------------------------------------------------------
# wrapper
# ----------------------------------------------------------------------------
def convglu_pallas(x_nchw, W, WG, bG, gamma, beta, *, eps=1e-5, tt=None):
    B, Cin, F, T = x_nchw.shape
    Cout, Cin2, K, Kw = W.shape
    assert Cin2 == Cin and Kw == 1
    cin_f = Cin * F
    cout_f = Cout * F

    # Pure reshape (no transpose, no extra HBM traffic): row index = c*F + f.
    x2 = x_nchw.reshape(B, cin_f, T)

    # Host-built block-circulant weights and flattened affine / bias columns.
    wc = _make_circulant(W[:, :, :, 0].astype(jnp.float32), F)              # f32
    wg = _make_circulant(WG[:, :, :, 0].astype(jnp.float32), F).astype(jnp.bfloat16)
    gamma2 = gamma.reshape(cin_f, 1).astype(jnp.float32)
    beta2 = beta.reshape(cin_f, 1).astype(jnp.float32)
    bias2 = jnp.repeat(bG.astype(jnp.float32), F).reshape(cout_f, 1)

    if tt is None:
        tt = _choose_time_tile(T, cin_f, cout_f)
    assert T % tt == 0 and (tt == T or tt % 128 == 0)
    grid = (B, T // tt)

    itemsize = x_nchw.dtype.itemsize
    # VMEM need from real padded block bytes (double-buffered I/O + weights +
    # in-kernel temporaries), instead of a hardcoded limit.
    vmem_need = (2 * _tile_bytes(cin_f, tt, itemsize)
                 + 2 * _tile_bytes(cout_f, tt, itemsize)
                 + _tile_bytes(cout_f, cin_f, 4) + _tile_bytes(cout_f, cin_f, 2)
                 + 2 * _tile_bytes(cin_f, 1, 4) + _tile_bytes(cout_f, 1, 4)
                 + 3 * _tile_bytes(cin_f, tt, 4) + 3 * _tile_bytes(cout_f, tt, 4))
    vmem_limit = int(min(max(3 * vmem_need, 16 << 20), 48 << 20))

    # Memory-bound cost hint for the XLA scheduler.
    flops = 4 * B * T * cout_f * cin_f                      # 2 matmuls
    transcendentals = B * T * (cout_f + 1)                  # sigmoid + rsqrt
    bytes_accessed = (B * cin_f * T * itemsize + B * cout_f * T * itemsize
                      + cout_f * cin_f * (4 + 2))
    cost = pl.CostEstimate(flops=int(flops),
                           transcendentals=int(transcendentals),
                           bytes_accessed=int(bytes_accessed))

    out2 = pl.pallas_call(
        functools.partial(convglu_kernel, eps=eps),
        out_shape=jax.ShapeDtypeStruct((B, cout_f, T), x_nchw.dtype),
        grid_spec=pltpu.PrefetchScalarGridSpec(
            num_scalar_prefetch=0,
            grid=grid,
            in_specs=[
                pl.BlockSpec((None, cin_f, tt), lambda b, t: (b, 0, t)),   # x
                pl.BlockSpec((cin_f, 1), lambda b, t: (0, 0)),             # gamma
                pl.BlockSpec((cin_f, 1), lambda b, t: (0, 0)),             # beta
                pl.BlockSpec((cout_f, cin_f), lambda b, t: (0, 0)),        # Wc
                pl.BlockSpec((cout_f, cin_f), lambda b, t: (0, 0)),        # Wg
                pl.BlockSpec((cout_f, 1), lambda b, t: (0, 0)),            # bias
            ],
            out_specs=pl.BlockSpec((None, cout_f, tt), lambda b, t: (b, 0, t)),
        ),
        compiler_params=pltpu.CompilerParams(
            dimension_semantics=("parallel", "parallel"),
            vmem_limit_bytes=vmem_limit),
        cost_estimate=cost,
    )(x2, gamma2, beta2, wc, wg, bias2)

    # Pure reshape back to NCHW (B, Cout, F, T).
    return out2.reshape(B, Cout, F, T)


# ----------------------------------------------------------------------------
# pure-JAX reference (matches the PyTorch module)
# ----------------------------------------------------------------------------
def convglu_reference(x_nchw, W, WG, bG, gamma, beta, eps=1e-5):
    K = W.shape[2]
    pad = K // 2

    def ln(x):
        xp = jnp.transpose(x, (0, 3, 1, 2))              # (B,T,C,F)
        mean = xp.mean(axis=(2, 3), keepdims=True)
        var = ((xp - mean) ** 2).mean(axis=(2, 3), keepdims=True)
        xn = (xp - mean) / jnp.sqrt(var + eps) * gamma + beta
        return jnp.transpose(xn, (0, 2, 3, 1))           # back to (B,C,F,T)

    def circ_conv(inp, w, b=None):
        inp_p = jnp.pad(inp, ((0, 0), (0, 0), (pad, pad), (0, 0)), mode="wrap")
        out = lax.conv_general_dilated(
            inp_p, w, window_strides=(1, 1), padding="VALID",
            dimension_numbers=("NCHW", "OIHW", "NCHW"),
            precision=lax.Precision.HIGHEST)
        if b is not None:
            out = out + b[None, :, None, None]
        return out

    return circ_conv(x_nchw, W) * jax.nn.sigmoid(circ_conv(ln(x_nchw), WG, bG))


if __name__ == "__main__":
    B, Cin, Cout, F, T, K = 2, 4, 6, 16, 16, 5

    key = jax.random.PRNGKey(0)
    k1, k2, k3, k4, k5, k6 = jax.random.split(key, 6)
    x = jax.random.normal(k1, (B, Cin, F, T), jnp.float32)
    W = 0.1 * jax.random.normal(k2, (Cout, Cin, K, 1), jnp.float32)   # conv (no bias)
    WG = 0.1 * jax.random.normal(k3, (Cout, Cin, K, 1), jnp.float32)  # convGate weight
    bG = 0.1 * jax.random.normal(k4, (Cout,), jnp.float32)            # convGate bias
    gamma = 1.0 + 0.1 * jax.random.normal(k5, (Cin, F), jnp.float32)  # LN weight
    beta = 0.1 * jax.random.normal(k6, (Cin, F), jnp.float32)         # LN bias

    out = jax.block_until_ready(convglu_pallas(x, W, WG, bG, gamma, beta))
    ref = jax.block_until_ready(convglu_reference(x, W, WG, bG, gamma, beta))

    # conv stream is f32; only the gate stream uses bf16 operands.
    np.testing.assert_allclose(np.asarray(out), np.asarray(ref), rtol=2e-2, atol=5e-3)

    print("KERNEL_OK")
</pallas_src>

<mosaic_0001>
module attributes {stable_mosaic.version = 11 : i64} {
  func.func @convglu_kernel(%arg0: i32, %arg1: i32, %arg2: memref<1x64x16xf32, #tpu.memory_space<vmem>>, %arg3: memref<64x1xf32, #tpu.memory_space<vmem>>, %arg4: memref<64x1xf32, #tpu.memory_space<vmem>>, %arg5: memref<96x64xf32, #tpu.memory_space<vmem>>, %arg6: memref<96x64xbf16, #tpu.memory_space<vmem>>, %arg7: memref<96x1xf32, #tpu.memory_space<vmem>>, %arg8: memref<1x96x16xf32, #tpu.memory_space<vmem>>) attributes {dimension_semantics = [#tpu.dimension_semantics<parallel>, #tpu.dimension_semantics<parallel>], iteration_bounds = array<i64: 2, 1>, scalar_prefetch = 0 : i64, scratch_operands = 0 : i64, tpu.core_type = #tpu.core_type<tc>, window_params = [{transform_indices = @transform_0, window_bounds = array<i64: 1, 64, 16>}, {pipeline_mode = #tpu.pipeline_mode<synchronous>, transform_indices = @transform_1, window_bounds = array<i64: 64, 1>}, {pipeline_mode = #tpu.pipeline_mode<synchronous>, transform_indices = @transform_2, window_bounds = array<i64: 64, 1>}, {pipeline_mode = #tpu.pipeline_mode<synchronous>, transform_indices = @transform_3, window_bounds = array<i64: 96, 64>}, {pipeline_mode = #tpu.pipeline_mode<synchronous>, transform_indices = @transform_4, window_bounds = array<i64: 96, 64>}, {pipeline_mode = #tpu.pipeline_mode<synchronous>, transform_indices = @transform_5, window_bounds = array<i64: 96, 1>}, {transform_indices = @transform_6, window_bounds = array<i64: 1, 96, 16>}]} {
    %c0 = arith.constant 0 : index
    %c0_0 = arith.constant 0 : index
    %c0_1 = arith.constant 0 : index
    %0 = vector.load %arg2[%c0, %c0_0, %c0_1] : memref<1x64x16xf32, #tpu.memory_space<vmem>>, vector<1x64x16xf32>
    %1 = vector.shape_cast %0 : vector<1x64x16xf32> to vector<64x16xf32>
    %cst = arith.constant dense<0.000000e+00> : vector<16xf32>
    %2 = vector.multi_reduction <add>, %1, %cst [0] : vector<64x16xf32> to vector<16xf32>
    %3 = vector.shape_cast %2 : vector<16xf32> to vector<1x16xf32>
    %cst_2 = arith.constant 6.400000e+01 : f32
    %4 = vector.broadcast %cst_2 : f32 to vector<1x16xf32>
    %5 = arith.divf %3, %4 : vector<1x16xf32>
    %6 = vector.broadcast %5 : vector<1x16xf32> to vector<64x16xf32>
    %7 = arith.subf %1, %6 : vector<64x16xf32>
    %8 = arith.mulf %7, %7 : vector<64x16xf32>
    %cst_3 = arith.constant dense<0.000000e+00> : vector<16xf32>
    %9 = vector.multi_reduction <add>, %8, %cst_3 [0] : vector<64x16xf32> to vector<16xf32>
    %10 = vector.shape_cast %9 : vector<16xf32> to vector<1x16xf32>
    %cst_4 = arith.constant 6.400000e+01 : f32
    %11 = vector.broadcast %cst_4 : f32 to vector<1x16xf32>
    %12 = arith.divf %10, %11 : vector<1x16xf32>
    %cst_5 = arith.constant 9.99999974E-6 : f32
    %13 = vector.broadcast %cst_5 : f32 to vector<1x16xf32>
    %14 = arith.addf %12, %13 : vector<1x16xf32>
    %15 = math.rsqrt %14 : vector<1x16xf32>
    %16 = vector.broadcast %5 : vector<1x16xf32> to vector<64x16xf32>
    %17 = arith.subf %1, %16 : vector<64x16xf32>
    %18 = vector.broadcast %15 : vector<1x16xf32> to vector<64x16xf32>
    %19 = arith.mulf %17, %18 : vector<64x16xf32>
    %c0_6 = arith.constant 0 : index
    %c0_7 = arith.constant 0 : index
    %20 = vector.load %arg3[%c0_6, %c0_7] : memref<64x1xf32, #tpu.memory_space<vmem>>, vector<64x1xf32>
    %21 = vector.broadcast %20 : vector<64x1xf32> to vector<64x16xf32>
    %22 = arith.mulf %19, %21 : vector<64x16xf32>
    %c0_8 = arith.constant 0 : index
    %c0_9 = arith.constant 0 : index
    %23 = vector.load %arg4[%c0_8, %c0_9] : memref<64x1xf32, #tpu.memory_space<vmem>>, vector<64x1xf32>
    %24 = vector.broadcast %23 : vector<64x1xf32> to vector<64x16xf32>
    %25 = arith.addf %22, %24 : vector<64x16xf32>
    %c0_10 = arith.constant 0 : index
    %c0_11 = arith.constant 0 : index
    %26 = vector.load %arg5[%c0_10, %c0_11] : memref<96x64xf32, #tpu.memory_space<vmem>>, vector<96x64xf32>
    %cst_12 = arith.constant dense<0.000000e+00> : vector<96x16xf32>
    %27 = tpu.matmul %26, %1, %cst_12 {dimension_numbers = #tpu.dot_dimension_numbers<[1], [0], [0], [1], [0, 0, 1, 1], [], []>} : vector<96x64xf32>, vector<64x16xf32>, vector<96x16xf32> -> vector<96x16xf32>
    %c0_13 = arith.constant 0 : index
    %c0_14 = arith.constant 0 : index
    %28 = vector.load %arg6[%c0_13, %c0_14] : memref<96x64xbf16, #tpu.memory_space<vmem>>, vector<96x64xbf16>
    %29 = arith.truncf %25 : vector<64x16xf32> to vector<64x16xbf16>
    %cst_15 = arith.constant dense<0.000000e+00> : vector<96x16xf32>
    %30 = tpu.matmul %28, %29, %cst_15 {dimension_numbers = #tpu.dot_dimension_numbers<[1], [0], [0], [1], [0, 0, 1, 1], [], []>} : vector<96x64xbf16>, vector<64x16xbf16>, vector<96x16xf32> -> vector<96x16xf32>
    %c0_16 = arith.constant 0 : index
    %c0_17 = arith.constant 0 : index
    %31 = vector.load %arg7[%c0_16, %c0_17] : memref<96x1xf32, #tpu.memory_space<vmem>>, vector<96x1xf32>
    %32 = vector.broadcast %31 : vector<96x1xf32> to vector<96x16xf32>
    %33 = arith.addf %30, %32 : vector<96x16xf32>
    %34 = arith.negf %33 : vector<96x16xf32>
    %35 = math.exp %34 : vector<96x16xf32>
    %cst_18 = arith.constant 1.000000e+00 : f32
    %36 = vector.broadcast %cst_18 : f32 to vector<96x16xf32>
    %37 = arith.addf %36, %35 : vector<96x16xf32>
    %38 = arith.divf %36, %37 : vector<96x16xf32>
    %39 = arith.mulf %27, %38 : vector<96x16xf32>
    %c0_19 = arith.constant 0 : index
    %c0_20 = arith.constant 0 : index
    %c0_21 = arith.constant 0 : index
    %40 = vector.load %arg8[%c0_19, %c0_20, %c0_21] : memref<1x96x16xf32, #tpu.memory_space<vmem>>, vector<1x96x16xf32>
    %41 = vector.shape_cast %40 : vector<1x96x16xf32> to vector<96x16xf32>
    %42 = vector.shape_cast %39 : vector<96x16xf32> to vector<1x96x16xf32>
    tpu.vector_store %arg8[%c0_19, %c0_20, %c0_21], %42 {strides = array<i32>} : memref<1x96x16xf32, #tpu.memory_space<vmem>>, vector<1x96x16xf32>,
    return
  }
  func.func @transform_0(%arg0: i32, %arg1: i32) -> (i32, i32, i32) {
    %c0_i32 = arith.constant 0 : i32
    %c0_i32_0 = arith.constant 0 : i32
    return %arg0, %c0_i32, %arg1 : i32, i32, i32
  }
  func.func @transform_1(%arg0: i32, %arg1: i32) -> (i32, i32) {
    %c0_i32 = arith.constant 0 : i32
    %c0_i32_0 = arith.constant 0 : i32
    %c0_i32_1 = arith.constant 0 : i32
    return %c0_i32, %c0_i32_0 : i32, i32
  }
  func.func @transform_2(%arg0: i32, %arg1: i32) -> (i32, i32) {
    %c0_i32 = arith.constant 0 : i32
    %c0_i32_0 = arith.constant 0 : i32
    %c0_i32_1 = arith.constant 0 : i32
    return %c0_i32, %c0_i32_0 : i32, i32
  }
  func.func @transform_3(%arg0: i32, %arg1: i32) -> (i32, i32) {
    %c0_i32 = arith.constant 0 : i32
    %c0_i32_0 = arith.constant 0 : i32
    %c0_i32_1 = arith.constant 0 : i32
    return %c0_i32, %c0_i32_0 : i32, i32
  }
  func.func @transform_4(%arg0: i32, %arg1: i32) -> (i32, i32) {
    %c0_i32 = arith.constant 0 : i32
    %c0_i32_0 = arith.constant 0 : i32
    %c0_i32_1 = arith.constant 0 : i32
    return %c0_i32, %c0_i32_0 : i32, i32
  }
  func.func @transform_5(%arg0: i32, %arg1: i32) -> (i32, i32) {
    %c0_i32 = arith.constant 0 : i32
    %c0_i32_0 = arith.constant 0 : i32
    %c0_i32_1 = arith.constant 0 : i32
    return %c0_i32, %c0_i32_0 : i32, i32
  }
  func.func @transform_6(%arg0: i32, %arg1: i32) -> (i32, i32, i32) {
    %c0_i32 = arith.constant 0 : i32
    %c0_i32_0 = arith.constant 0 : i32
    return %arg0, %c0_i32, %arg1 : i32, i32, i32
  }
}

</mosaic_0001>

<bundles_post_ra>
// kernel: tpu_custom_call.1
= control target key start
LH: loop header
LB: loop body
LE: loop exit
PB: predicated region body
PF: predicated region fallthrough
CT: control target
= control target key end

     0   :  { %s1337_s21 = smov 0   ;;  %s1339_s22 = smov 0   ;;  %s1688_s0 = inlined_call_operand.vmem [shape: f32[2,64,16], index: 0, kind: input, shape index: {}]   ;;  %s1689_s1 = inlined_call_operand.vmem [shape: f32[64,1], index: 1, kind: input, shape index: {}]   ;;  %s1690_s2 = inlined_call_operand.vmem [shape: f32[64,1], index: 2, kind: input, shape index: {}]   ;;  %s1691_s3 = inlined_call_operand.vmem [shape: f32[96,64], index: 3, kind: input, shape index: {}]   ;;  %s1692_s4 = inlined_call_operand.vmem [shape: bf16[96,64], index: 4, kind: input, shape index: {}]   ;;  %s1693_s5 = inlined_call_operand.vmem [shape: f32[96,1], index: 5, kind: input, shape index: {}]   ;;  %s1694_s6 = inlined_call_operand.vmem [shape: f32[2,96,16], index: 6, kind: output, shape index: {}]  }
   0x1   :  { %s1341_s23 = smov 0  }
   0x2 LB: > { %s28_s24 = sadd.s32 1, %s1295_s22  ;;  %p1050_p0 = scmp.ge.s32.totalorder %s1299_s23, 1  ;;  %s1299_s23 = sphi %s1341_s23, %s16_s23   ;;  %s1295_s22 = sphi %s1339_s22, %s1696_s22   ;;  %s1291_s21 = sphi %s1337_s21, %s1695_s21  }
   0x3   : > { %p30_p1 = scmp.ge.s32.totalorder %s28_s24, 2  ;;  %p231_p2 = scmp.lt.s32.totalorder %s1299_s23, 3 }
   0x5   : > { %s1698_s24 = smov (%p30_p1, %s28_s24), 0  ;;  %p232_p3 = pnand %p1050_p0, %p231_p2 }
   0x6   : > { %v420_v0 = vld [vmem:[%s1690_s2] sm:$0xff] (!%p232_p3)  ;;  %p267_p4 = scmp.lt.s32.totalorder (!%p232_p3), %s1291_s21, 1  ;;  %v1301_v2 = vmov (!%p232_p3), 0   ;;  %v421_v3 = vld [vmem:[%s1690_s2 + $0x8] sm:$0xff] (!%p232_p3)  ;;  %v367_v5 = vld [vmem:[%s1689_s1 + $0x18] sm:$0xff] (!%p232_p3)  ;;  %vm292_vm0 = vcmask (!%p232_p3), 130048  }
   0x7   : > { %235 = sbr.rel (%p232_p3) target bundleno = 435 (0x1b3), region = 44  ;;  %v364_v1 = vld [vmem:[%s1689_s1] sm:$0xff] (!%p232_p3)  ;;  %1220 = vset.pattern.permute.xlu1 (!%p232_p3), %v1301_v2  ;;  %1219 = vset.pattern.permute.xlu0 (!%p232_p3), %v1301_v2  ;;  %v365_v4 = vld [vmem:[%s1689_s1 + $0x8] sm:$0xff] (!%p232_p3)  ;;  %v366_v6 = vld [vmem:[%s1689_s1 + $0x10] sm:$0xff] (!%p232_p3)  ;;  %vm488_vm1 = vcmask (!%p232_p3), 523264  }
   0x8   : > { %430 = vperm.xlu1 (!%p232_p3), %1220, %v420_v0   ;;  %374 = vperm.xlu0 (!%p232_p3), %1219, %v364_v1   ;;  %v423_v14 = vld [vmem:[%s1690_s2 + $0x18] sm:$0xff] (!%p232_p3)  ;;  %v422_v15 = vld [vmem:[%s1690_s2 + $0x10] sm:$0xff] (!%p232_p3)  ;;  %v369_v21 = vld [vmem:[%s1689_s1 + $0x28] sm:$0xff] (!%p232_p3) }
   0x9   : > { %v368_v22 = vld [vmem:[%s1689_s1 + $0x20] sm:$0xff] (!%p232_p3)  ;;  %v425_v30 = vld [vmem:[%s1690_s2 + $0x28] sm:$0xff] (!%p232_p3)  ;;  %v371_v35 = vld [vmem:[%s1689_s1 + $0x38] sm:$0xff] (!%p232_p3) }
   0xa   : > { %v424_v31 = vld [vmem:[%s1690_s2 + $0x20] sm:$0xff] (!%p232_p3)  ;;  %v370_v36 = vld [vmem:[%s1689_s1 + $0x30] sm:$0xff] (!%p232_p3)  ;;  %v427_v39 = vld [vmem:[%s1690_s2 + $0x38] sm:$0xff] (!%p232_p3) }
   0xb   : > { %v426_v40 = vld [vmem:[%s1690_s2 + $0x30] sm:$0xff] (!%p232_p3)  ;;  %v667_v43 = vld [vmem:[%s1693_s5 + $0x8] sm:$0xff] (!%p232_p3)  ;;  %v666_v44 = vld [vmem:[%s1693_s5] sm:$0xff] (!%p232_p3) }
   0xc   : > { %435 = vperm.xlu1 (!%p232_p3), %1220, %v421_v3   ;;  %379 = vperm.xlu0 (!%p232_p3), %1219, %v365_v4   ;;  %v669_v47 = vld [vmem:[%s1693_s5 + $0x18] sm:$0xff] (!%p232_p3)  ;;  %v668_v48 = vld [vmem:[%s1693_s5 + $0x10] sm:$0xff] (!%p232_p3)  ;;  %v1221_v49 = vld [vmem:[%s1692_s4] sm:$0xff] (!%p232_p3)  }
   0xd   : > { %1165 = vmatprep.mubr.msk.bf16.mxu1 (!%p232_p3), %vm488_vm1, %v1221_v49  ;;  %v671_v51 = vld [vmem:[%s1693_s5 + $0x28] sm:$0xff] (!%p232_p3)  ;;  %v670_v52 = vld [vmem:[%s1693_s5 + $0x20] sm:$0xff] (!%p232_p3)  ;;  %v673_v54 = vld [vmem:[%s1693_s5 + $0x38] sm:$0xff] (!%p232_p3) }
   0xe   : > { %s1700_s21 = smov (!%p267_p4, %s1291_s21), 1  ;;  %v672_v55 = vld [vmem:[%s1693_s5 + $0x30] sm:$0xff]  ;;  %v675_v59 = vld [vmem:[%s1693_s5 + $0x48] sm:$0xff]  ;;  %v674_v60 = vld [vmem:[%s1693_s5 + $0x40] sm:$0xff] }
   0xf   : > { %s1092_s9 = sshll.u32 %s1700_s21, 6  ;;  %v677_v1 = vld [vmem:[%s1693_s5 + $0x58] sm:$0xff]  ;;  %v676_v2 = vld [vmem:[%s1693_s5 + $0x50] sm:$0xff]  ;;  %s1193_s17 = smul.u32 96, %s1700_s21 }
  0x10   : > { %s274_s12 = scalar_lea.vmem %s1688_s0, %s1092_s9  ;;  %389 = vperm.xlu1 %1220, %v367_v5   ;;  %384 = vperm.xlu0 %1219, %v366_v6  }
  0x11   : > { %v1379_v7 = vld [vmem:[%s274_s12] sm:$0xff]  ;;  %v1381_v8 = vld [vmem:[%s274_s12 + $0x8] sm:$0xff]  ;;  %v1383_v9 = vld [vmem:[%s274_s12 + $0x10] sm:$0xff]  ;;  %s1641_s20 = scalar_lea.vmem %s1694_s6, %s1193_s17 }
  0x12   : > { %v1385_v10 = vld [vmem:[%s274_s12 + $0x18] sm:$0xff]  ;;  %v1387_v11 = vld [vmem:[%s274_s12 + $0x20] sm:$0xff]  ;;  %v293_v12 = vsel %vm292_vm0, %v1379_v7, 0.0  ;;  %v294_v13 = vsel %vm292_vm0, %v1381_v8, 0.0  ;;  %v296_v17 = vsel %vm292_vm0, %v1383_v9, 0.0  ;;  %v1401_v18 = vld [vmem:[%s274_s12 + $0x28] sm:$0xff]  ;;  %v1177_v58 = vpack.c.bf16 %v1381_v8, %v1379_v7 }
  0x13   : > { %v295_v16 = vadd.f32 %v294_v13, %v293_v12  ;;  %v298_v19 = vsel %vm292_vm0, %v1385_v10, 0.0  ;;  %v300_v20 = vsel %vm292_vm0, %v1387_v11, 0.0  ;;  %v1413_v23 = vld [vmem:[%s274_s12 + $0x30] sm:$0xff]  ;;  %v302_v26 = vsel %vm292_vm0, %v1401_v18, 0.0  ;;  %v1417_v27 = vld [vmem:[%s274_s12 + $0x38] sm:$0xff] }
  0x14   : > { %445 = vperm.xlu1 %1220, %v423_v14   ;;  %440 = vperm.xlu0 %1219, %v422_v15   ;;  %v304_v29 = vsel %vm292_vm0, %v1413_v23, 0.0  ;;  %v306_v33 = vsel %vm292_vm0, %v1417_v27, 0.0  ;;  %v1181_v61 = vpack.c.bf16 %v1385_v10, %v1383_v9  ;;  %v1185_v3 = vpack.c.bf16 %v1401_v18, %v1387_v11 }
  0x15   : > { %v297_v24 = vadd.f32 %v296_v17, %v295_v16  ;;  %1178 = vmatprep.subr.bf16.mxu0 %v1177_v58 }
  0x16   : > { %1180 = vmatpush3.bf16.msra.mxu0 %v1177_v58 }
  0x17   : > { %v299_v25 = vadd.f32 %v298_v19, %v297_v24  ;;  %1182 = vmatprep.subr.bf16.mxu0 %v1181_v61 }
  0x18   : > { %399 = vperm.xlu1 %1220, %v369_v21   ;;  %394 = vperm.xlu0 %1219, %v368_v22  }
  0x19   : > { %v301_v28 = vadd.f32 %v300_v20, %v299_v25  ;;  %v478_v20 = vld [vmem:[%s1691_s3 + $0x10] sm:$0xff]  ;;  %v479_v25 = vld [vmem:[%s1691_s3 + $0x18] sm:$0xff] }
  0x1a   : > { %1184 = vmatpush3.bf16.msra.mxu0 %v1181_v61 }
  0x1b   : > { %v303_v32 = vadd.f32 %v302_v26, %v301_v28  ;;  %1186 = vmatprep.subr.bf16.mxu0 %v1185_v3  ;;  %v480_v26 = vld [vmem:[%s1691_s3 + $0x20] sm:$0xff] }
  0x1c   : > { %455 = vperm.xlu1 %1220, %v425_v30   ;;  %450 = vperm.xlu0 %1219, %v424_v31   ;;  %v481_v31 = vld [vmem:[%s1691_s3 + $0x28] sm:$0xff] }
  0x1d   : > { %v305_v34 = vadd.f32 %v304_v29, %v303_v32  ;;  %v482_v32 = vld [vmem:[%s1691_s3 + $0x30] sm:$0xff] }
  0x1e   : > { %1188 = vmatpush3.bf16.msra.mxu0 %v1185_v3 }
  0x1f   : > { %v307_v37 = vadd.f32 %v306_v33, %v305_v34 }
  0x20   : > { %409 = vperm.xlu1 %1220, %v371_v35   ;;  %404 = vperm.xlu0 %1219, %v370_v36   ;;  %v483_v35 = vld [vmem:[%s1691_s3 + $0x38] sm:$0xff]  ;;  %v484_v36 = vld [vmem:[%s1691_s3 + $0x40] sm:$0xff] }
  0x21   : > { %v308_v38 = vrot.slane %v307_v37, 4 }
  0x23   : > { %v309_v41 = vadd.f32 %v308_v38, %v307_v37 }
  0x24   : > { %465 = vperm.xlu1 %1220, %v427_v39   ;;  %460 = vperm.xlu0 %1219, %v426_v40   ;;  %v485_v39 = vld [vmem:[%s1691_s3 + $0x48] sm:$0xff]  ;;  %v486_v40 = vld [vmem:[%s1691_s3 + $0x50] sm:$0xff] }
  0x25   : > { %v310_v42 = vrot.slane %v309_v41, 2 }
  0x27   : > { %v311_v45 = vadd.f32 %v310_v42, %v309_v41  ;;  %v487_v42 = vld [vmem:[%s1691_s3 + $0x58] sm:$0xff] }
  0x28   : > { %685 = vperm.xlu1 %1220, %v667_v43   ;;  %680 = vperm.xlu0 %1219, %v666_v44  }
  0x29   : > { %v312_v46 = vrot.slane %v311_v45, 1 }
  0x2b   : > { %v313_v50 = vadd.f32 %v312_v46, %v311_v45 }
  0x2c   : > { %695 = vperm.xlu1 %1220, %v669_v47   ;;  %690 = vperm.xlu0 %1219, %v668_v48  }
  0x2d   : > { %v315_v53 = vmul.f32 0.015625, %v313_v50 }
  0x2f   : > { %v1470_v56 = vsub.f32 %v1379_v7, %v315_v53  ;;  %v1473_v57 = vsub.f32 %v1381_v8, %v315_v53  ;;  %v1486_v62 = vsub.f32 %v1383_v9, %v315_v53  ;;  %v1501_v4 = vsub.f32 %v1385_v10, %v315_v53  ;;  %v476_v9 = vld [vmem:[%s1691_s3] sm:$0xff] }
  0x30   : > { %705 = vperm.xlu1 %1220, %v671_v51   ;;  %700 = vperm.xlu0 %1219, %v670_v52   ;;  %v1189_v8 = vpack.c.bf16 %v1417_v27, %v1413_v23  ;;  %v1514_v12 = vsub.f32 %v1387_v11, %v315_v53  ;;  %v1520_v16 = vsub.f32 %v1401_v18, %v315_v53  ;;  %v477_v11 = vld [vmem:[%s1691_s3 + $0x8] sm:$0xff] }
  0x31   : > { %v324_v63 = vmul.f32 %v1470_v56, %v1470_v56  ;;  %v325_v0 = vmul.f32 %v1473_v57, %v1473_v57  ;;  %v326_v5 = vmul.f32 %v1486_v62, %v1486_v62  ;;  %1139 = vmatprep.mubr.msk.f32.mxu0 %vm488_vm1, %v476_v9  ;;  %v327_v13 = vmul.f32 %v1501_v4, %v1501_v4 }
  0x32   : > { %1190 = vmatprep.subr.bf16.mxu0 %v1189_v8  ;;  %v328_v17 = vmul.f32 %v1514_v12, %v1514_v12  ;;  %v1533_v18 = vsub.f32 %v1413_v23, %v315_v53  ;;  %v329_v22 = vmul.f32 %v1520_v16, %v1520_v16  ;;  %v1547_v23 = vsub.f32 %v1417_v27, %v315_v53 }
  0x33   : > { %v332_v6 = vsel %vm292_vm0, %v324_v63, 0.0  ;;  %v333_v7 = vsel %vm292_vm0, %v325_v0, 0.0  ;;  %v335_v14 = vsel %vm292_vm0, %v326_v5, 0.0  ;;  %v337_v19 = vsel %vm292_vm0, %v327_v13, 0.0  ;;  %1192 = vmatpush3.bf16.msra.mxu0 %v1189_v8 }
  0x34   : > { %715 = vperm.xlu1 %1220, %v673_v54   ;;  %710 = vperm.xlu0 %1219, %v672_v55   ;;  %v334_v10 = vadd.f32 %v333_v7, %v332_v6  ;;  %v339_v24 = vsel %vm292_vm0, %v328_v17, 0.0  ;;  %v330_v29 = vmul.f32 %v1533_v18, %v1533_v18  ;;  %v341_v30 = vsel %vm292_vm0, %v329_v22, 0.0 }
  0x35   : > { %v331_v27 = vmul.f32 %v1547_v23, %v1547_v23 }
  0x36   : > { %v336_v15 = vadd.f32 %v335_v14, %v334_v10  ;;  %1140 = vmatmul.mubr.msk.f32.vlgmr.msra.gmra.mrb[0].mxu0 %vm488_vm1, %v477_v11  ;;  %v343_v34 = vsel %vm292_vm0, %v330_v29, 0.0 }
  0x37   : > { %1142 = vmatprep.mubr.msk.f32.mxu0 %vm488_vm1, %v478_v20  ;;  %v345_v38 = vsel %vm292_vm0, %v331_v27, 0.0 }
  0x38   : > { %725 = vperm.xlu1 %1220, %v675_v59   ;;  %720 = vperm.xlu0 %1219, %v674_v60   ;;  %v338_v21 = vadd.f32 %v337_v19, %v336_v15 }
  0x3a   : > { %v340_v28 = vadd.f32 %v339_v24, %v338_v21  ;;  %1143 = vmatmul.mubr.msk.f32.gmra.mrb[2].mxu0 %vm488_vm1, %v479_v25 }
  0x3b   : > { %1145 = vmatprep.mubr.msk.f32.mxu0 %vm488_vm1, %v480_v26 }
  0x3c   : > { %735 = vperm.xlu1 %1220, %v677_v1   ;;  %730 = vperm.xlu0 %1219, %v676_v2   ;;  %v342_v33 = vadd.f32 %v341_v30, %v340_v28 }
  0x3e   : > { %1146 = vmatmul.mubr.msk.f32.gmra.mrb[4].mxu0 %vm488_vm1, %v481_v31  ;;  %v344_v37 = vadd.f32 %v343_v34, %v342_v33  ;;  %v1222_v34 = vld [vmem:[%s1692_s4 + $0x8] sm:$0xff]  }
  0x3f   : > { %1148 = vmatprep.mubr.msk.f32.mxu0 %vm488_vm1, %v482_v32 }
  0x40   : > { %v346_v41 = vadd.f32 %v345_v38, %v344_v37 }
  0x42   : > { %1149 = vmatmul.mubr.msk.f32.gmra.mrb[6].mxu0 %vm488_vm1, %v483_v35  ;;  %v347_v43 = vrot.slane %v346_v41, 4  ;;  %v1225_v35 = vld [vmem:[%s1692_s4 + $0x20] sm:$0xff]  }
  0x43   : > { %1151 = vmatprep.mubr.msk.f32.mxu0 %vm488_vm1, %v484_v36  ;;  %v1226_v36 = vld [vmem:[%s1692_s4 + $0x28] sm:$0xff]  }
  0x44   : > { %v348_v44 = vadd.f32 %v347_v43, %v346_v41 }
  0x46   : > { %1152 = vmatmul.mubr.msk.f32.gmra.mrb[8].mxu0 %vm488_vm1, %v485_v39  ;;  %v349_v45 = vrot.slane %v348_v44, 2 }
  0x47   : > { %1154 = vmatprep.mubr.msk.f32.mxu0 %vm488_vm1, %v486_v40 }
  0x48   : > { %v350_v46 = vadd.f32 %v349_v45, %v348_v44 }
  0x4a   : > { %1155 = vmatmul.mubr.msk.f32.gmra.mrb[10].mxu0 %vm488_vm1, %v487_v42  ;;  %v351_v47 = vrot.slane %v350_v46, 1 }
  0x4c   : > { %v352_v48 = vadd.f32 %v351_v47, %v350_v46 }
  0x4e   : > { %v353_v49 = vmul.f32 0.015625, %v352_v48 }
  0x50   : > { %v354_v50 = vadd.f32 1e-05, %v353_v49 }
  0x52   : > { %1227 = vrsqrt.f32 %v354_v50 }
  0x5c   : > { %v1228_v51 = vpop.eup %1227 }
  0x5d   : > { %v356_v52 = vmul.f32 %v1228_v51, %v1470_v56  ;;  %v357_v55 = vmul.f32 %v1228_v51, %v1473_v57  ;;  %v359_v1 = vmul.f32 %v1228_v51, %v1501_v4  ;;  %v358_v2 = vmul.f32 %v1228_v51, %v1486_v62 }
  0x5e   : > { %v361_v14 = vmul.f32 %v1228_v51, %v1520_v16  ;;  %v360_v15 = vmul.f32 %v1228_v51, %v1514_v12  ;;  %v363_v25 = vmul.f32 %v1228_v51, %v1547_v23  ;;  %v362_v26 = vmul.f32 %v1228_v51, %v1533_v18  ;;  %v1223_v18 = vld [vmem:[%s1692_s4 + $0x10] sm:$0xff]   ;;  %v1224_v23 = vld [vmem:[%s1692_s4 + $0x18] sm:$0xff]  }
  0x87   : > { %v431_v53 = vpop.permute.xlu1 %430  ;;  %v375_v54 = vpop.permute.xlu0 %374 }
  0x88   : > { %v412_v58 = vmul.f32 %v375_v54, %v356_v52 }
  0x8a   : > { %v468_v63 = vadd.f32 %v431_v53, %v412_v58 }
  0x8b   : > { %v436_v59 = vpop.permute.xlu1 %435  ;;  %v380_v60 = vpop.permute.xlu0 %379 }
  0x8c   : > { %v413_v61 = vmul.f32 %v380_v60, %v357_v55 }
  0x8e   : > { %v469_v0 = vadd.f32 %v436_v59, %v413_v61 }
  0x8f   : > { %v390_v3 = vpop.permute.xlu1 %389  ;;  %v385_v5 = vpop.permute.xlu0 %384 }
  0x90   : > { %v662_v6 = vpack.c.bf16 %v469_v0, %v468_v63  ;;  %v415_v7 = vmul.f32 %v390_v3, %v359_v1  ;;  %v414_v8 = vmul.f32 %v385_v5, %v358_v2 }
  0x92   : > { %1157 = vmatprep.subr.bf16.mxu1 %v662_v6 }
  0x93   : > { %v446_v56 = vpop.permute.xlu1 %445  ;;  %v441_v9 = vpop.permute.xlu0 %440  ;;  %1158 = vmatpush3.bf16.msra.mxu1 %v662_v6 }
  0x94   : > { %v471_v57 = vadd.f32 %v446_v56, %v415_v7  ;;  %v470_v10 = vadd.f32 %v441_v9, %v414_v8 }
  0x96   : > { %v663_v13 = vpack.c.bf16 %v471_v57, %v470_v10 }
  0x97   : > { %v400_v17 = vpop.permute.xlu1 %399  ;;  %v395_v4 = vpop.permute.xlu0 %394 }
  0x98   : > { %1159 = vmatprep.subr.bf16.mxu1 %v663_v13  ;;  %v417_v62 = vmul.f32 %v400_v17, %v361_v14  ;;  %v416_v19 = vmul.f32 %v395_v4, %v360_v15 }
  0x99   : > { %1160 = vmatpush3.bf16.msra.mxu1 %v663_v13 }
  0x9b   : > { %v456_v11 = vpop.permute.xlu1 %455  ;;  %v451_v20 = vpop.permute.xlu0 %450 }
  0x9c   : > { %v473_v21 = vadd.f32 %v456_v11, %v417_v62  ;;  %v472_v22 = vadd.f32 %v451_v20, %v416_v19 }
  0x9e   : > { %v664_v24 = vpack.c.bf16 %v473_v21, %v472_v22 }
  0x9f   : > { %v410_v28 = vpop.permute.xlu1 %409  ;;  %v405_v29 = vpop.permute.xlu0 %404 }
  0xa0   : > { %1161 = vmatprep.subr.bf16.mxu1 %v664_v24  ;;  %v419_v12 = vmul.f32 %v410_v28, %v363_v25  ;;  %v418_v16 = vmul.f32 %v405_v29, %v362_v26 }
  0xa1   : > { %1162 = vmatpush3.bf16.msra.mxu1 %v664_v24 }
  0xa3   : > { %v466_v30 = vpop.permute.xlu1 %465  ;;  %v461_v31 = vpop.permute.xlu0 %460 }
  0xa4   : > { %v475_v32 = vadd.f32 %v466_v30, %v419_v12  ;;  %v474_v33 = vadd.f32 %v461_v31, %v418_v16 }
  0xa6   : > { %v665_v27 = vpack.c.bf16 %v475_v32, %v474_v33 }
  0xa7   : > { %v681_v49 = vpop.permute.xlu0 %680  ;;  %v686_v50 = vpop.permute.xlu1 %685 }
  0xa8   : > { %1163 = vmatprep.subr.bf16.mxu1 %v665_v27 }
  0xa9   : > { %1164 = vmatpush3.bf16.msra.mxu1 %v665_v27 }
  0xab   : > { %v691_v51 = vpop.permute.xlu0 %690  ;;  %v696_v52 = vpop.permute.xlu1 %695 }
  0xac   : > { %1166 = vmatmul.mubr.msk.bf16.vlgmr.msra.gmra.mrb[0].mxu1 %vm488_vm1, %v1222_v34 }
  0xad   : > { %1169 = vmatprep.mubr.msk.bf16.mxu1 %vm488_vm1, %v1223_v18 }
  0xaf   : > { %v701_v53 = vpop.permute.xlu0 %700  ;;  %v706_v54 = vpop.permute.xlu1 %705 }
  0xb3   : > { %v711_v2 = vpop.permute.xlu0 %710  ;;  %v716_v7 = vpop.permute.xlu1 %715 }
  0xb4   : > { %1170 = vmatmul.mubr.msk.bf16.gmra.mrb[4].mxu1 %vm488_vm1, %v1224_v23 }
  0xb5   : > { %1173 = vmatprep.mubr.msk.bf16.mxu1 %vm488_vm1, %v1225_v35 }
  0xb7   : > { %v721_v10 = vpop.permute.xlu0 %720  ;;  %v726_v62 = vpop.permute.xlu1 %725 }
  0xbb   : > { %v731_v25 = vpop.permute.xlu0 %730  ;;  %v736_v32 = vpop.permute.xlu1 %735 }
  0xbc   : > { %1174 = vmatmul.mubr.msk.bf16.gmra.mrb[8].mxu1 %vm488_vm1, %v1226_v36 }
 0x109   : > { %v1613_v37 = vpop.f32.mrb[0].mxu0 }
 0x10a   : > { %v1615_v38 = vpop.f32.mrb[1].mxu0 }
 0x10d   : > { %v1617_v39 = vpop.f32.mrb[2].mxu0 }
 0x10e   : > { %v1619_v40 = vpop.f32.mrb[3].mxu0 }
 0x111   : > { %v1621_v41 = vpop.f32.mrb[4].mxu0 }
 0x112   : > { %v1623_v42 = vpop.f32.mrb[5].mxu0 }
 0x115   : > { %v1625_v43 = vpop.f32.mrb[6].mxu0 }
 0x116   : > { %v1627_v44 = vpop.f32.mrb[7].mxu0 }
 0x119   : > { %v1629_v45 = vpop.f32.mrb[8].mxu0 }
 0x11a   : > { %v1631_v46 = vpop.f32.mrb[9].mxu0 }
 0x11d   : > { %v1633_v47 = vpop.f32.mrb[10].mxu0 }
 0x11e   : > { %v1635_v48 = vpop.f32.mrb[11].mxu0 }
 0x17f   : > { %v1167_v55 = vpop.f32.mrb[0].mxu1 }
 0x180   : > { %v829_v58 = vadd.f32 %v1167_v55, %v691_v51  ;;  %v820_v59 = vpop.f32.mrb[1].mxu1 }
 0x181   : > { %v821_v60 = vadd.f32 %v820_v59, %v681_v49  ;;  %v1168_v61 = vpop.f32.mrb[2].mxu1 }
 0x182   : > { %v1080_v63 = vmul.f32 -1.442695, %v829_v58  ;;  %v832_v0 = vadd.f32 %v1168_v61, %v696_v52  ;;  %v823_v1 = vpop.f32.mrb[3].mxu1 }
 0x183   : > { %v1078_v3 = vmul.f32 -1.442695, %v821_v60  ;;  %v824_v5 = vadd.f32 %v823_v1, %v686_v50 }
 0x184   : > { %1229 = vpow2.f32 %v1080_v63  ;;  %v1081_v6 = vmul.f32 -1.442695, %v832_v0 }
 0x185   : > { %1231 = vpow2.f32 %v1078_v3  ;;  %v1079_v8 = vmul.f32 -1.442695, %v824_v5 }
 0x186   : > { %1233 = vpow2.f32 %v1081_v6 }
 0x187   : > { %1235 = vpow2.f32 %v1079_v8  ;;  %v1171_v56 = vpop.f32.mrb[4].mxu1 }
 0x188   : > { %v845_v9 = vadd.f32 %v1171_v56, %v711_v2  ;;  %v836_v57 = vpop.f32.mrb[5].mxu1 }
 0x189   : > { %v837_v13 = vadd.f32 %v836_v57, %v701_v53  ;;  %v1172_v14 = vpop.f32.mrb[6].mxu1 }
 0x18a   : > { %v1084_v15 = vmul.f32 -1.442695, %v845_v9  ;;  %v848_v17 = vadd.f32 %v1172_v14, %v716_v7  ;;  %v839_v4 = vpop.f32.mrb[7].mxu1 }
 0x18b   : > { %v1082_v19 = vmul.f32 -1.442695, %v837_v13  ;;  %v840_v11 = vadd.f32 %v839_v4, %v706_v54 }
 0x18c   : > { %1237 = vpow2.f32 %v1084_v15  ;;  %v1085_v20 = vmul.f32 -1.442695, %v848_v17 }
 0x18d   : > { %1239 = vpow2.f32 %v1082_v19  ;;  %v1083_v21 = vmul.f32 -1.442695, %v840_v11 }
 0x18e   : > { %v1230_v22 = vpop.eup %1229  ;;  %1241 = vpow2.f32 %v1085_v20 }
 0x18f   : > { %v1232_v24 = vpop.eup %1231  ;;  %v905_v26 = vadd.f32 1.0, %v1230_v22  ;;  %1243 = vpow2.f32 %v1083_v21  ;;  %v1175_v28 = vpop.f32.mrb[8].mxu1 }
 0x190   : > { %v1234_v29 = vpop.eup %1233  ;;  %v903_v12 = vadd.f32 1.0, %v1232_v24  ;;  %v861_v16 = vadd.f32 %v1175_v28, %v731_v25  ;;  %v852_v30 = vpop.f32.mrb[9].mxu1 }
 0x191   : > { %v1236_v31 = vpop.eup %1235  ;;  %1245 = vrcp.f32 %v905_v26  ;;  %v906_v33 = vadd.f32 1.0, %v1234_v29  ;;  %v853_v27 = vadd.f32 %v852_v30, %v721_v10  ;;  %v1176_v34 = vpop.f32.mrb[10].mxu1 }
 0x192   : > { %1247 = vrcp.f32 %v903_v12  ;;  %v904_v18 = vadd.f32 1.0, %v1236_v31  ;;  %v1088_v23 = vmul.f32 -1.442695, %v861_v16  ;;  %v864_v35 = vadd.f32 %v1176_v34, %v736_v32  ;;  %v855_v36 = vpop.f32.mrb[11].mxu1 }
 0x193   : > { %1249 = vrcp.f32 %v906_v33  ;;  %v1086_v49 = vmul.f32 -1.442695, %v853_v27  ;;  %v856_v50 = vadd.f32 %v855_v36, %v726_v62 }
 0x194   : > { %1251 = vrcp.f32 %v904_v18  ;;  %v1089_v51 = vmul.f32 -1.442695, %v864_v35 }
 0x195   : > { %1253 = vpow2.f32 %v1088_v23  ;;  %v1087_v52 = vmul.f32 -1.442695, %v856_v50 }
 0x196   : > { %v1238_v53 = vpop.eup %1237  ;;  %1255 = vpow2.f32 %v1086_v49 }
 0x197   : > { %v1240_v54 = vpop.eup %1239  ;;  %v909_v55 = vadd.f32 1.0, %v1238_v53  ;;  %1257 = vpow2.f32 %v1089_v51 }
 0x198   : > { %v1242_v58 = vpop.eup %1241  ;;  %v907_v59 = vadd.f32 1.0, %v1240_v54  ;;  %1259 = vpow2.f32 %v1087_v52 }
 0x199   : > { %v1244_v60 = vpop.eup %1243  ;;  %1261 = vrcp.f32 %v909_v55  ;;  %v910_v61 = vadd.f32 1.0, %v1242_v58 }
 0x19a   : > { %1263 = vrcp.f32 %v907_v59  ;;  %v908_v63 = vadd.f32 1.0, %v1244_v60 }
 0x19b   : > { %v1246_v0 = vpop.eup %1245  ;;  %1265 = vrcp.f32 %v910_v61 }
 0x19c   : > { %v1248_v1 = vpop.eup %1247  ;;  %1267 = vrcp.f32 %v908_v63  ;;  %v941_v2 = vmul.f32 %v1246_v0, %v1619_v40 }
 0x19d   : > { %v1250_v3 = vpop.eup %1249  ;;  %v939_v5 = vmul.f32 %v1248_v1, %v1615_v38 }
 0x19e   : > { %v1252_v6 = vpop.eup %1251  ;;  %v942_v7 = vmul.f32 %v1250_v3, %v1617_v39  ;;  %953 = vst.msk [vmem:[%s1641_s20 + $0x10] sm:$0xff] %vm292_vm0, %v941_v2 }
 0x19f   : > { %v1254_v8 = vpop.eup %1253  ;;  %v940_v56 = vmul.f32 %v1252_v6, %v1613_v37  ;;  %951 = vst.msk [vmem:[%s1641_s20] sm:$0xff] %vm292_vm0, %v939_v5 }
 0x1a0   : > { %v1256_v9 = vpop.eup %1255  ;;  %v913_v57 = vadd.f32 1.0, %v1254_v8  ;;  %954 = vst.msk [vmem:[%s1641_s20 + $0x18] sm:$0xff] %vm292_vm0, %v942_v7 }
 0x1a1   : > { %v1258_v10 = vpop.eup %1257  ;;  %v911_v13 = vadd.f32 1.0, %v1256_v9  ;;  %952 = vst.msk [vmem:[%s1641_s20 + $0x8] sm:$0xff] %vm292_vm0, %v940_v56 }
 0x1a2   : > { %v1260_v38 = vpop.eup %1259  ;;  %1269 = vrcp.f32 %v913_v57  ;;  %v914_v39 = vadd.f32 1.0, %v1258_v10 }
 0x1a3   : > { %v1262_v40 = vpop.eup %1261  ;;  %1271 = vrcp.f32 %v911_v13  ;;  %v912_v37 = vadd.f32 1.0, %v1260_v38 }
 0x1a4   : > { %v1264_v14 = vpop.eup %1263  ;;  %1273 = vrcp.f32 %v914_v39  ;;  %v945_v15 = vmul.f32 %v1262_v40, %v1627_v44 }
 0x1a5   : > { %v1266_v17 = vpop.eup %1265  ;;  %1275 = vrcp.f32 %v912_v37  ;;  %v943_v4 = vmul.f32 %v1264_v14, %v1623_v42 }
 0x1a6   : > { %v1268_v62 = vpop.eup %1267  ;;  %v946_v19 = vmul.f32 %v1266_v17, %v1625_v43  ;;  %957 = vst.msk [vmem:[%s1641_s20 + $0x30] sm:$0xff] %vm292_vm0, %v945_v15 }
 0x1a7   : > { %v944_v11 = vmul.f32 %v1268_v62, %v1621_v41  ;;  %955 = vst.msk [vmem:[%s1641_s20 + $0x20] sm:$0xff] %vm292_vm0, %v943_v4 }
 0x1a8   : > { %958 = vst.msk [vmem:[%s1641_s20 + $0x38] sm:$0xff] %vm292_vm0, %v946_v19 }
 0x1a9   : > { %956 = vst.msk [vmem:[%s1641_s20 + $0x28] sm:$0xff] %vm292_vm0, %v944_v11 }
 0x1ac   : > { %v1270_v44 = vpop.eup %1269 }
 0x1ad   : > { %v1272_v20 = vpop.eup %1271  ;;  %v949_v42 = vmul.f32 %v1270_v44, %v1635_v48 }
 0x1ae   : > { %v1274_v21 = vpop.eup %1273  ;;  %v947_v22 = vmul.f32 %v1272_v20, %v1631_v46 }
 0x1af   : > { %v1276_v43 = vpop.eup %1275  ;;  %v950_v24 = vmul.f32 %v1274_v21, %v1633_v47  ;;  %961 = vst.msk [vmem:[%s1641_s20 + $0x50] sm:$0xff] %vm292_vm0, %v949_v42 }
 0x1b0   : > { %v948_v41 = vmul.f32 %v1276_v43, %v1629_v45  ;;  %959 = vst.msk [vmem:[%s1641_s20 + $0x40] sm:$0xff] %vm292_vm0, %v947_v22 }
 0x1b1   : > { %962 = vst.msk [vmem:[%s1641_s20 + $0x58] sm:$0xff] %vm292_vm0, %v950_v24 }
 0x1b2   : > { %960 = vst.msk [vmem:[%s1641_s20 + $0x48] sm:$0xff] %vm292_vm0, %v948_v41 }
 0x1b3 PF: > { %s16_s23 = sadd.s32 1, %s1299_s23   ;;  %s1695_s21 = smov %s1295_s22 }
 0x1b4   : > { %p13_p5 = scmp.ge.s32.totalorder %s16_s23, 4   ;;  %s1696_s22 = smov %s1698_s24 }
 0x1b6   :  { %15 = sbr.rel (!%p13_p5) target bundleno = 2 (0x2), region = 74 }

</bundles_post_ra>
